<compile_context>
chip_gen: v5e
topology: v5e:2x2
jax: 0.10.0
libtpu: 0.0.40
codegen_flags: <defaults>
</compile_context>

<pallas_src>
import jax
import jax.numpy as jnp
from jax.experimental import pallas as pl
from jax.experimental.pallas import tpu as pltpu

_SUBLANE_PAD = 16                 # multiple of 8 (f32) and 16 (bf16) sublanes
_TARGET_BLOCK_BYTES = 2 << 20     # ~2 MiB per operand block (1-4 MiB sweet spot)


def _sigmoid_kernel(x_ref, o_ref):
    # Exact sigmoid; exp runs on the EUP slot, the divide is cheap and the
    # kernel is HBM-bound anyway.  f32 math keeps v5e (no bf16 VPU/EUP) happy.
    x = x_ref[...].astype(jnp.float32)
    y = 1.0 / (1.0 + jnp.exp(-x))
    o_ref[...] = y.astype(o_ref.dtype)


def _round_up(n, m):
    return -(-n // m) * m


def nutty_forward(x):
    """Apply Sigmoid elementwise to a tensor via a Pallas TPU kernel."""
    orig_shape = x.shape
    total = x.size
    itemsize = jnp.dtype(x.dtype).itemsize
    flat = x.reshape(-1)

    # ---- lane-dense 2D layout (free metadata reshape in the common case) ----
    pad = 0
    for cols in (512, 256, 128):
        if total % cols == 0:
            break
    else:
        cols = 128
        pad = (-total) % cols
        flat = jnp.pad(flat, (0, pad))          # rare path only
    rows = (total + pad) // cols
    x2d = flat.reshape(rows, cols)

    # ---- block sizing --------------------------------------------------------
    # ~2 MiB per operand block, block_rows a multiple of 16, and (when rows
    # allow) at least 2 grid steps so v7x can use both TensorCores.
    if rows <= _SUBLANE_PAD:
        block_rows = rows                        # single (full-extent) block
    else:
        target_rows = max(
            _SUBLANE_PAD,
            (_TARGET_BLOCK_BYTES // (cols * itemsize)) // _SUBLANE_PAD * _SUBLANE_PAD,
        )
        half_rows = max(_SUBLANE_PAD, _round_up(-(-rows // 2), _SUBLANE_PAD))
        block_rows = min(target_rows, half_rows)

    grid = (pl.cdiv(rows, block_rows),)          # ragged last block masked by Pallas

    out2d = pl.pallas_call(
        _sigmoid_kernel,
        out_shape=jax.ShapeDtypeStruct(x2d.shape, x2d.dtype),
        grid=grid,
        in_specs=[pl.BlockSpec((block_rows, cols), lambda i: (i, 0))],
        out_specs=pl.BlockSpec((block_rows, cols), lambda i: (i, 0)),
        compiler_params=pltpu.CompilerParams(
            dimension_semantics=("parallel",),
        ),
    )(x2d)

    out_flat = out2d.reshape(-1)
    if pad:
        out_flat = out_flat[:total]
    return out_flat.reshape(orig_shape)


if __name__ == "__main__":
    key = jax.random.PRNGKey(0)
    # Mirror the PyTorch script: input reshaped to (-1, 1, 2, 2).
    # 65536 elements -> (16384, 1, 2, 2): small, but big enough to exercise
    # the lane-dense reshape and a >=2-step pipelined/parallel grid.
    x = jax.random.normal(key, (65536,), dtype=jnp.float32)
    x = x.reshape(-1, 1, 2, 2)

    out = nutty_forward(x)
    out = jax.block_until_ready(out)

    # Sanity check against plain-JAX reference (Nutty has no parameters;
    # forward is just Sigmoid — the ReLU member is unused).
    ref = jax.nn.sigmoid(x)
    assert out.shape == x.shape
    assert jnp.allclose(out, ref, atol=2e-6, rtol=2e-6), "mismatch vs reference sigmoid"

    print("KERNEL_OK")
</pallas_src>

<mosaic_0001>
module attributes {stable_mosaic.version = 11 : i64} {
  func.func @_sigmoid_kernel(%arg0: i32, %arg1: memref<64x512xf32, #tpu.memory_space<vmem>>, %arg2: memref<64x512xf32, #tpu.memory_space<vmem>>) attributes {dimension_semantics = [#tpu.dimension_semantics<parallel>], iteration_bounds = array<i64: 2>, scalar_prefetch = 0 : i64, scratch_operands = 0 : i64, tpu.core_type = #tpu.core_type<tc>, window_params = [{transform_indices = @transform_0, window_bounds = array<i64: 64, 512>}, {transform_indices = @transform_1, window_bounds = array<i64: 64, 512>}]} {
    %c0 = arith.constant 0 : index
    %c0_0 = arith.constant 0 : index
    %0 = vector.load %arg1[%c0, %c0_0] : memref<64x512xf32, #tpu.memory_space<vmem>>, vector<64x512xf32>
    %cst = arith.constant 0.000000e+00 : f32
    %1 = vector.broadcast %cst : f32 to vector<64x512xf32>
    %2 = arith.subf %1, %0 : vector<64x512xf32>
    %3 = math.exp %2 : vector<64x512xf32>
    %cst_1 = arith.constant 1.000000e+00 : f32
    %4 = vector.broadcast %cst_1 : f32 to vector<64x512xf32>
    %5 = arith.addf %4, %3 : vector<64x512xf32>
    %cst_2 = arith.constant 1.000000e+00 : f32
    %6 = vector.broadcast %cst_2 : f32 to vector<64x512xf32>
    %7 = arith.divf %6, %5 : vector<64x512xf32>
    %c0_3 = arith.constant 0 : index
    %c0_4 = arith.constant 0 : index
    %8 = vector.load %arg2[%c0_3, %c0_4] : memref<64x512xf32, #tpu.memory_space<vmem>>, vector<64x512xf32>
    tpu.vector_store %arg2[%c0_3, %c0_4], %7 {strides = array<i32>} : memref<64x512xf32, #tpu.memory_space<vmem>>, vector<64x512xf32>,
    return
  }
  func.func @transform_0(%arg0: i32) -> (i32, i32) {
    %c0_i32 = arith.constant 0 : i32
    %c0_i32_0 = arith.constant 0 : i32
    return %arg0, %c0_i32 : i32, i32
  }
  func.func @transform_1(%arg0: i32) -> (i32, i32) {
    %c0_i32 = arith.constant 0 : i32
    %c0_i32_0 = arith.constant 0 : i32
    return %arg0, %c0_i32 : i32, i32
  }
}

</mosaic_0001>

<bundles_post_ra>
// kernel: tpu_custom_call.1
= control target key start
LH: loop header
LB: loop body
LE: loop exit
PB: predicated region body
PF: predicated region fallthrough
CT: control target
= control target key end

     0   :  { %6 = vsyncpa [#allocation3], 0  ;;  %s2063_s0 = inlined_call_operand.hbm [shape: f32[128,512], index: 0, kind: input, shape index: {}]   ;;  %s2064_s1 = inlined_call_operand.hbm [shape: f32[128,512], index: 1, kind: output, shape index: {}]  }
   0x1   :  { %8 = vsyncpa [#allocation3 + $0x1], 0 }
   0x2   :  { %9 = vsyncpa [#allocation4], 0 }
   0x3   :  { %11 = vsyncpa [#allocation4 + $0x1], 0  ;;  %s1212_s6 = smov 0   ;;  %s1214_s7 = smov 0  }
   0x4   :  { %s1216_s8 = smov 0   ;;  %s1218_s9 = smov 0  }
   0x5 LB: > { %s1233_s10 = sadd.s32 4294967295, %s1196_s9   ;;  %s902_s11 = sadd.s32 4294967294, %s1196_s9   ;;  %s1196_s9 = sphi %s1218_s9, %s2185_s9   ;;  %s1192_s8 = sphi %s1216_s8, %s2184_s8   ;;  %s1188_s7 = sphi %s1214_s7, %s2183_s7   ;;  %s1184_s6 = sphi %s1212_s6, %s2182_s6  }
   0x6   : > { %s1237_s12 = sadd.s32 1, %s1196_s9   ;;  %s24_s13 = sadd.s32 1, %s1192_s8 }
   0x7   : > { %s21_s14 = ssub.s32 %s1196_s9, %s1237_s12  ;;  %p31_p0 = scmp.ne.s32.totalorder %s1192_s8, %s1188_s7 }
   0x8   : > { %p22_p1 = scmp.eq.s32.totalorder %s21_s14, 0  ;;  %p32_p2 = scmp.eq.s32.totalorder %s1196_s9, 0 }
   0x9   : > { %p37_p3 = scmp.ne.s32.totalorder %s1188_s7, %s1184_s6  ;;  %p38_p4 = scmp.eq.s32.totalorder %s1233_s10, 0 }
   0xa   : > { %s1249_s15 = scalar_select %p22_p1, %s1192_s8, %s24_s13  }
   0xb   : > { %p1251_p5 = por %p32_p2, %p31_p0  ;;  %p1255_p6 = por %p38_p4, %p37_p3 }
   0xc   : > { %p61_p7 = scmp.eq.s32.totalorder %s1233_s10, 1  ;;  %p67_p8 = scmp.eq.s32.totalorder %s902_s11, 1 }
   0xd   : > { %p934_p10 = scmp.lt.s32.totalorder %s1196_s9, 2  ;;  %s87_s20 = sand.u32 1, %s1192_s8  }
   0xe   : > { %p1262_p11 = por %p61_p7, %p31_p0  ;;  %p1266_p12 = por %p67_p8, %p37_p3 }
   0xf   : > { %s919_s21 = sshll.u32 %s1196_s9, 8  ;;  %s905_s22 = sshll.u32 %s87_s20, 8 }
  0x10   : > { %s97_s25 = scalar_lea.hbm %s2063_s0, %s919_s21  ;;  %s91_s27 = scalar_lea.vmem [#allocation2], %s905_s22 }
  0x11   : > { %s98_s26 = sshll.u32 %s97_s25, 4  ;;  %s100_s28 = sshll.u32 %s91_s27, 4  ;;  %s99_s26 = int_to_ptr.hbm [resolvable:$true] %s98_s26  ;;  %s101_s28 = int_to_ptr.vmem [resolvable:$true] %s100_s28 }
  0x12   : > { %p1277_p13 = pnand %p934_p10, %p1251_p5  ;;  %p909_p0 = scmp.ge.s32.totalorder %s1196_s9, 1 }
  0x13   : > { %p108_p1 = scmp.lt.s32.totalorder %s1196_s9, 3  ;;  %s88_s30 = scalar_lea.sflag [#allocation3], %s87_s20 }
  0x14   : > { %s1100_s2 = sshra.s32 %s99_s26, 4  ;;  %p1104_p3 = pneg %p1277_p13  ;;  %s1101_s2 = int_to_ptr.hbm [resolvable:$true] %s1100_s2 }
  0x15   : > { %s1102_s3 = scalar_lea.hbm %s1101_s2, 256  ;;  %s1107_s11 = scalar_lea.hbm %s2063_s0, 512 }
  0x16   : > { %p1103_p2 = scmp.ne.s32.totalorder %s1101_s2, %s1102_s3  ;;  %p1108_p5 = scmp.lt.s32.totalorder %s1101_s2, %s2063_s0 }
  0x17   : > { %p1109_p8 = scmp.lt.s32.totalorder %s1107_s11, %s1102_s3 }
  0x18   : > { %p1105_p4 = pnand %p1104_p3, %p1103_p2 }
  0x19   : > { %p1110_p10 = por %p1109_p8, %p1108_p5 }
  0x1a   : > { %p1106_p7 = pneg %p1105_p4 }
  0x1c   : > { %p1111_p9 = pnand %p1110_p10, %p1106_p7 }
  0x1e   : > { %1114 = shalt.err (!%p1111_p9)
}
  0x1f   : > { %s1198_s16 = smov 512   ;;  %s1199_s20 = smov 32  }
  0x20   : > { %929 = dma.hbm_to_vmem [thread:$0]  (!%p1277_p13), %s99_s26, 4096, %s101_s28, %s88_s30, %s1198_s16, %s1198_s16, %s1199_s20  }
  0x21   : > { %p109_p2 = pnand %p909_p0, %p108_p1 }
  0x22   : > { %s1298_s21 = sand.u32 (!%p109_p2), 1, %s1188_s7  }
  0x23   : > { %112 = sbr.rel (%p109_p2) target bundleno = 190 (0xbe), region = 24  ;;  %s910_s22 = sshll.u32 (!%p109_p2), %s1298_s21, 8 }
  0x24   : > { %s115_s23 = scalar_lea.sflag (!%p109_p2), [#allocation3], %s1298_s21  ;;  %s1304_s24 = scalar_lea.vmem (!%p109_p2), [#allocation2], %s910_s22 }
  0x28   : > { %1175 = dma.done.wait (%p1255_p6), %s115_s23, 4096  }
  0x29   : > { %1177 = vsyncadd (%p1255_p6), %s115_s23, 4294963200  ;;  %v140_v0 = vld [vmem:[%s1304_s24] sm:$0xff]  ;;  %v141_v1 = vld [vmem:[%s1304_s24 + $0x8] sm:$0xff]  ;;  %s1433_s17 = scalar_lea.vmem [#allocation5], %s910_s22  ;;  %s921_s25 = sshll.u32 %s1233_s10, 8 }
  0x2a   : > { %v142_v2 = vld [vmem:[%s1304_s24 + $0x10] sm:$0xff]  ;;  %v172_v3 = vsub.f32 0.0, %v140_v0  ;;  %v173_v4 = vsub.f32 0.0, %v141_v1  ;;  %v143_v6 = vld [vmem:[%s1304_s24 + $0x18] sm:$0xff]  ;;  %v144_v7 = vld [vmem:[%s1304_s24 + $0x20] sm:$0xff]  ;;  %s825_s27 = scalar_lea.hbm %s2064_s1, %s921_s25  ;;  %s826_s28 = sshll.u32 %s1433_s17, 4  ;;  %s827_s28 = int_to_ptr.vmem [resolvable:$true] %s826_s28 }
  0x2b   : > { %v174_v5 = vsub.f32 0.0, %v142_v2  ;;  %v145_v8 = vld [vmem:[%s1304_s24 + $0x28] sm:$0xff]  ;;  %v175_v9 = vsub.f32 0.0, %v143_v6  ;;  %v176_v10 = vsub.f32 0.0, %v144_v7  ;;  %v146_v12 = vld [vmem:[%s1304_s24 + $0x30] sm:$0xff]  ;;  %v147_v13 = vld [vmem:[%s1304_s24 + $0x38] sm:$0xff] }
  0x2c   : > { %v177_v11 = vsub.f32 0.0, %v145_v8  ;;  %v204_v14 = vmul.f32 1.442695, %v172_v3  ;;  %v206_v15 = vmul.f32 1.442695, %v173_v4  ;;  %v178_v19 = vsub.f32 0.0, %v146_v12 }
  0x2d   : > { %v208_v16 = vmul.f32 1.442695, %v174_v5  ;;  %v210_v17 = vmul.f32 1.442695, %v175_v9  ;;  %v212_v18 = vmul.f32 1.442695, %v176_v10 }
  0x2e   : > { %972 = vpow2.f32 %v204_v14  ;;  %v179_v20 = vsub.f32 0.0, %v147_v13  ;;  %v214_v21 = vmul.f32 1.442695, %v177_v11  ;;  %v148_v22 = vld [vmem:[%s1304_s24 + $0x40] sm:$0xff]  ;;  %v149_v23 = vld [vmem:[%s1304_s24 + $0x48] sm:$0xff]  ;;  %v150_v24 = vld [vmem:[%s1304_s24 + $0x50] sm:$0xff] }
  0x2f   : > { %974 = vpow2.f32 %v206_v15  ;;  %v216_v25 = vmul.f32 1.442695, %v178_v19  ;;  %v151_v26 = vld [vmem:[%s1304_s24 + $0x58] sm:$0xff]  ;;  %v180_v28 = vsub.f32 0.0, %v148_v22  ;;  %v181_v29 = vsub.f32 0.0, %v149_v23  ;;  %v1325_v35 = vld [vmem:[%s1304_s24 + $0x60] sm:$0xff] }
  0x30   : > { %976 = vpow2.f32 %v208_v16  ;;  %v218_v27 = vmul.f32 1.442695, %v179_v20  ;;  %v182_v30 = vsub.f32 0.0, %v150_v24  ;;  %v183_v32 = vsub.f32 0.0, %v151_v26  ;;  %v1336_v43 = vld [vmem:[%s1304_s24 + $0x68] sm:$0xff]  ;;  %s828_s29 = sshll.u32 %s825_s27, 4  ;;  %s829_s29 = int_to_ptr.hbm [resolvable:$true] %s828_s29 }
  0x31   : > { %978 = vpow2.f32 %v210_v17  ;;  %v220_v38 = vmul.f32 1.442695, %v180_v28  ;;  %v1331_v41 = vmul.f32 1.442695, %v181_v29  ;;  %v184_v47 = vsub.f32 0.0, %v1325_v35  ;;  %s813_s30 = scalar_lea.sflag [#allocation4], %s1298_s21 }
  0x32   : > { %980 = vpow2.f32 %v212_v18  ;;  %v1333_v42 = vmul.f32 1.442695, %v182_v30  ;;  %v1340_v46 = vmul.f32 1.442695, %v183_v32  ;;  %v185_v54 = vsub.f32 0.0, %v1336_v43  ;;  %s1144_s2 = sshra.s32 %s829_s29, 4  ;;  %s1145_s2 = int_to_ptr.hbm [resolvable:$true] %s1144_s2 }
  0x33   : > { %982 = vpow2.f32 %v214_v21  ;;  %s1146_s3 = scalar_lea.hbm %s1145_s2, 256  ;;  %s1150_s11 = scalar_lea.hbm %s2064_s1, 512 }
  0x34   : > { %v973_v31 = vpop.eup %972  ;;  %984 = vpow2.f32 %v216_v25  ;;  %v230_v11 = vmul.f32 1.442695, %v185_v54  ;;  %p1147_p6 = scmp.ne.s32.totalorder %s1145_s2, %s1146_s3  ;;  %p1151_p0 = scmp.lt.s32.totalorder %s1145_s2, %s2064_s1 }
  0x35   : > { %v975_v33 = vpop.eup %974  ;;  %v1322_v34 = vadd.f32 1.0, %v973_v31  ;;  %986 = vpow2.f32 %v218_v27  ;;  %p1152_p1 = scmp.lt.s32.totalorder %s1150_s11, %s1146_s3 }
  0x36   : > { %v977_v36 = vpop.eup %976  ;;  %v1327_v37 = vadd.f32 1.0, %v975_v33  ;;  %p1148_p9 = pnand %p1147_p6, %p1262_p11 }
  0x37   : > { %v979_v39 = vpop.eup %978  ;;  %988 = vrcp.f32 %v1322_v34  ;;  %v311_v40 = vand.u32 2147483648, %v1322_v34  ;;  %v309_v45 = vand.u32 2147483647, %v1322_v34  ;;  %v1345_v51 = vadd.f32 1.0, %v977_v36  ;;  %p1153_p3 = por %p1152_p1, %p1151_p0 }
  0x38   : > { %v981_v44 = vpop.eup %980  ;;  %990 = vrcp.f32 %v1327_v37  ;;  %v324_v49 = vand.u32 2147483647, %v1327_v37  ;;  %v326_v50 = vand.u32 2147483648, %v1327_v37  ;;  %v1347_v52 = vadd.f32 1.0, %v979_v39  ;;  %p1149_p13 = pneg %p1148_p9 }
  0x39   : > { %v983_v48 = vpop.eup %982  ;;  %vm305_vm0 = vweird.f32 %v1322_v34  ;;  %v1350_v53 = vadd.f32 1.0, %v981_v44  ;;  %992 = vpow2.f32 %v220_v38  ;;  %v312_v56 = vor.u32 1.1754944e-38, %v311_v40 }
  0x3a   : > { %v985_v55 = vpop.eup %984  ;;  %vm320_vm1 = vweird.f32 %v1327_v37  ;;  %994 = vrcp.f32 %v1345_v51  ;;  %v341_v57 = vand.u32 2147483648, %v1345_v51  ;;  %vm1356_vm2 = vcmp.eq.f32.partialorder %v309_v45, 8.507059e+37  ;;  %p1154_p4 = pnand %p1153_p3, %p1149_p13 }
  0x3b   : > { %v987_v58 = vpop.eup %986  ;;  %v339_v60 = vand.u32 2147483647, %v1345_v51  ;;  %996 = vrcp.f32 %v1347_v52  ;;  %v356_v61 = vand.u32 2147483648, %v1347_v52  ;;  %v1363_v62 = vadd.f32 1.0, %v983_v48 }
  0x3c   : > { %vm1365_vm3 = vcmp.eq.f32.partialorder %v324_v49, 8.507059e+37  ;;  %v327_v1 = vor.u32 1.1754944e-38, %v326_v50  ;;  %v354_v2 = vand.u32 2147483647, %v1347_v52  ;;  %998 = vrcp.f32 %v1350_v53 }
  0x3d   : > { %v989_v63 = vpop.eup %988  ;;  %vm335_vm4 = vweird.f32 %v1345_v51  ;;  %v1373_v5 = vor.u32 1.1754944e-38, %v341_v57  ;;  %vm350_vm5 = vweird.f32 %v1347_v52  ;;  %vm365_vm6 = vweird.f32 %v1350_v53 }
  0x3e   : > { %v991_v3 = vpop.eup %990  ;;  %v301_v4 = vmul.f32 %v989_v63, %v1322_v34  ;;  %v369_v7 = vand.u32 2147483647, %v1350_v53  ;;  %v371_v8 = vand.u32 2147483648, %v1350_v53  ;;  %vm306_vm7 = vweird.f32 %v989_v63 }
  0x3f   : > { %v316_v6 = vmul.f32 %v991_v3, %v1327_v37  ;;  %v993_v9 = vpop.eup %992  ;;  %vm1380_vm8 = vcmp.eq.f32.partialorder %v339_v60, 8.507059e+37  ;;  %v357_v12 = vor.u32 1.1754944e-38, %v356_v61  ;;  %1000 = vrcp.f32 %v1363_v62  ;;  %vm1399_vm13 = vmor %vm305_vm0, %vm306_vm7 }
  0x40   : > { %v302_v10 = vsub.f32 1.0, %v301_v4  ;;  %v995_v13 = vpop.eup %994  ;;  %vm321_vm9 = vweird.f32 %v991_v3  ;;  %vm1385_vm10 = vcmp.eq.f32.partialorder %v354_v2, 8.507059e+37  ;;  %v384_v16 = vand.u32 2147483647, %v1363_v62 }
  0x41   : > { %v317_v14 = vsub.f32 1.0, %v316_v6  ;;  %v997_v17 = vpop.eup %996  ;;  %v331_v19 = vmul.f32 %v995_v13, %v1345_v51  ;;  %vm1392_vm12 = vcmp.eq.f32.partialorder %v369_v7, 8.507059e+37  ;;  %v372_v21 = vor.u32 1.1754944e-38, %v371_v8  ;;  %vm1408_vm15 = vmor %vm320_vm1, %vm321_vm9 }
  0x42   : > { %v303_v18 = vmul.f32 %v989_v63, %v302_v10  ;;  %v999_v22 = vpop.eup %998  ;;  %vm336_vm14 = vweird.f32 %v995_v13  ;;  %v346_v25 = vmul.f32 %v997_v17, %v1347_v52  ;;  %v386_v26 = vand.u32 2147483648, %v1363_v62 }
  0x43   : > { %v318_v24 = vmul.f32 %v991_v3, %v317_v14  ;;  %v332_v29 = vsub.f32 1.0, %v331_v19  ;;  %vm351_vm11 = vweird.f32 %v997_v17  ;;  %v361_v30 = vmul.f32 %v999_v22, %v1350_v53  ;;  %vm1426_vm1 = vmor %vm335_vm4, %vm336_vm14 }
  0x44   : > { %v304_v27 = vadd.f32 %v989_v63, %v303_v18  ;;  %v347_v32 = vsub.f32 1.0, %v346_v25  ;;  %vm366_vm0 = vweird.f32 %v999_v22  ;;  %v1413_v33 = vadd.f32 1.0, %v985_v55 }
  0x45   : > { %v319_v31 = vadd.f32 %v991_v3, %v318_v24  ;;  %v1001_v34 = vpop.eup %1000  ;;  %v333_v38 = vmul.f32 %v995_v13, %v332_v29  ;;  %v362_v37 = vsub.f32 1.0, %v361_v30  ;;  %v1417_v39 = vadd.f32 1.0, %v987_v58  ;;  %vm1451_vm4 = vmor %vm365_vm6, %vm366_vm0 }
  0x46   : > { %v308_v36 = vsel %vm1399_vm13, %v989_v63, %v304_v27  ;;  %v348_v48 = vmul.f32 %v997_v17, %v347_v32  ;;  %v376_v49 = vmul.f32 %v1001_v34, %v1363_v62  ;;  %v1445_v57 = vadd.f32 1.0, %v993_v9  ;;  %v156_v27 = vld [vmem:[%s1304_s24 + $0x80] sm:$0xff] }
  0x47   : > { %v313_v40 = vsel %vm1356_vm2, %v312_v56, %v308_v36  ;;  %v323_v44 = vsel %vm1408_vm15, %v991_v3, %v319_v31  ;;  %v334_v55 = vadd.f32 %v995_v13, %v333_v38  ;;  %vm1441_vm2 = vmor %vm350_vm5, %vm351_vm11  ;;  %v363_v56 = vmul.f32 %v999_v22, %v362_v37  ;;  %v154_v3 = vld [vmem:[%s1304_s24 + $0x70] sm:$0xff] }
  0x48   : > { %780 = vst [vmem:[%s1433_s17] sm:$0xff] %v313_v40  ;;  %v328_v50 = vsel %vm1365_vm3, %v327_v1, %v323_v44  ;;  %v349_v58 = vadd.f32 %v997_v17, %v348_v48  ;;  %v377_v60 = vsub.f32 1.0, %v376_v49  ;;  %vm381_vm3 = vweird.f32 %v1001_v34  ;;  %v158_v40 = vld [vmem:[%s1304_s24 + $0x90] sm:$0xff] }
  0x49   : > { %781 = vst [vmem:[%s1433_s17 + $0x8] sm:$0xff] %v328_v50  ;;  %1002 = vrcp.f32 %v1413_v33  ;;  %v338_v52 = vsel %vm1426_vm1, %v995_v13, %v334_v55  ;;  %v364_v61 = vadd.f32 %v999_v22, %v363_v56  ;;  %v399_v63 = vand.u32 2147483647, %v1413_v33 }
  0x4a   : > { %v401_v0 = vand.u32 2147483648, %v1413_v33  ;;  %v343_v53 = vsel %vm1380_vm8, %v1373_v5, %v338_v52  ;;  %v353_v1 = vsel %vm1441_vm2, %v997_v17, %v349_v58  ;;  %v378_v2 = vmul.f32 %v1001_v34, %v377_v60 }
  0x4b   : > { %1004 = vrcp.f32 %v1417_v39  ;;  %782 = vst [vmem:[%s1433_s17 + $0x10] sm:$0xff] %v343_v53  ;;  %v358_v4 = vsel %vm1385_vm10, %v357_v12, %v353_v1  ;;  %v368_v6 = vsel %vm1451_vm4, %v999_v22, %v364_v61  ;;  %vm2090_vm5 = vweird.f32 %v1363_v62 }
  0x4c   : > { %vm1474_vm6 = vmor %vm2090_vm5, %vm381_vm3  ;;  %v387_v5 = vor.u32 1.1754944e-38, %v386_v26  ;;  %v228_v8 = vmul.f32 1.442695, %v184_v47  ;;  %783 = vst [vmem:[%s1433_s17 + $0x18] sm:$0xff] %v358_v4  ;;  %v373_v9 = vsel %vm1392_vm12, %v372_v21, %v368_v6  ;;  %v379_v10 = vadd.f32 %v1001_v34, %v378_v2 }
  0x4d   : > { %vm385_vm7 = vcmp.eq.f32.partialorder %v384_v16, 8.507059e+37  ;;  %784 = vst [vmem:[%s1433_s17 + $0x20] sm:$0xff] %v373_v9  ;;  %vm395_vm8 = vweird.f32 %v1413_v33  ;;  %vm1487_vm9 = vcmp.eq.f32.partialorder %v399_v63, 8.507059e+37  ;;  %1006 = vrcp.f32 %v1445_v57  ;;  %v155_v16 = vld [vmem:[%s1304_s24 + $0x78] sm:$0xff] }
  0x4e   : > { %v186_v35 = vsub.f32 0.0, %v154_v3  ;;  %v383_v12 = vsel %vm1474_vm6, %v1001_v34, %v379_v10  ;;  %v402_v13 = vor.u32 1.1754944e-38, %v401_v0  ;;  %v414_v43 = vand.u32 2147483647, %v1417_v39  ;;  %v157_v34 = vld [vmem:[%s1304_s24 + $0x88] sm:$0xff] }
  0x4f   : > { %v1003_v47 = vpop.eup %1002  ;;  %1008 = vpow2.f32 %v1331_v41  ;;  %v388_v54 = vsel %vm385_vm7, %v387_v5, %v383_v12  ;;  %vm410_vm10 = vweird.f32 %v1417_v39  ;;  %v416_v15 = vand.u32 2147483648, %v1417_v39 }
  0x50   : > { %v391_v14 = vmul.f32 %v1003_v47, %v1413_v33  ;;  %785 = vst [vmem:[%s1433_s17 + $0x28] sm:$0xff] %v388_v54  ;;  %vm425_vm11 = vweird.f32 %v1445_v57  ;;  %v429_v18 = vand.u32 2147483647, %v1445_v57  ;;  %v431_v19 = vand.u32 2147483648, %v1445_v57 }
  0x51   : > { %v1005_v17 = vpop.eup %1004  ;;  %1010 = vpow2.f32 %v1333_v42  ;;  %vm396_vm12 = vweird.f32 %v1003_v47  ;;  %vm1507_vm13 = vcmp.eq.f32.partialorder %v414_v43, 8.507059e+37  ;;  %v232_v22 = vmul.f32 1.442695, %v186_v35 }
  0x52   : > { %v392_v41 = vsub.f32 1.0, %v391_v14  ;;  %v406_v20 = vmul.f32 %v1005_v17, %v1417_v39  ;;  %1012 = vpow2.f32 %v1340_v46  ;;  %v187_v23 = vsub.f32 0.0, %v155_v16  ;;  %vm1514_vm15 = vmor %vm395_vm8, %vm396_vm12  ;;  %v159_v46 = vld [vmem:[%s1304_s24 + $0x98] sm:$0xff] }
  0x53   : > { %1014 = vpow2.f32 %v228_v8  ;;  %v1007_v24 = vpop.eup %1006  ;;  %vm411_vm14 = vweird.f32 %v1005_v17  ;;  %v417_v42 = vor.u32 1.1754944e-38, %v416_v15  ;;  %vm1519_vm0 = vcmp.eq.f32.partialorder %v429_v18, 8.507059e+37 }
  0x54   : > { %v393_v25 = vmul.f32 %v1003_v47, %v392_v41  ;;  %v407_v26 = vsub.f32 1.0, %v406_v20  ;;  %v421_v29 = vmul.f32 %v1007_v24, %v1445_v57  ;;  %v432_v31 = vor.u32 1.1754944e-38, %v431_v19  ;;  %vm1530_vm1 = vmor %vm410_vm10, %vm411_vm14  ;;  %v161_v20 = vld [vmem:[%s1304_s24 + $0xa8] sm:$0xff] }
  0x55   : > { %v1009_v28 = vpop.eup %1008  ;;  %v234_v32 = vmul.f32 1.442695, %v187_v23  ;;  %1016 = vpow2.f32 %v230_v11  ;;  %vm426_vm2 = vweird.f32 %v1007_v24  ;;  %v188_v48 = vsub.f32 0.0, %v156_v27 }
  0x56   : > { %v394_v36 = vadd.f32 %v1003_v47, %v393_v25  ;;  %v408_v38 = vmul.f32 %v1005_v17, %v407_v26  ;;  %v1524_v37 = vadd.f32 1.0, %v1009_v28  ;;  %v422_v45 = vsub.f32 1.0, %v421_v29  ;;  %vm1545_vm4 = vmor %vm425_vm11, %vm426_vm2 }
  0x57   : > { %v1011_v33 = vpop.eup %1010  ;;  %1018 = vpow2.f32 %v232_v22  ;;  %v189_v51 = vsub.f32 0.0, %v157_v34  ;;  %v190_v59 = vsub.f32 0.0, %v158_v40  ;;  %v236_v6 = vmul.f32 1.442695, %v188_v48 }
  0x58   : > { %v1013_v49 = vpop.eup %1012  ;;  %v398_v50 = vsel %vm1514_vm15, %v1003_v47, %v394_v36  ;;  %v409_v55 = vadd.f32 %v1005_v17, %v408_v38  ;;  %1020 = vrcp.f32 %v1524_v37  ;;  %v423_v58 = vmul.f32 %v1007_v24, %v422_v45 }
  0x59   : > { %v1015_v56 = vpop.eup %1014  ;;  %v403_v39 = vsel %vm1487_vm9, %v402_v13, %v398_v50  ;;  %1022 = vpow2.f32 %v234_v32  ;;  %v444_v61 = vand.u32 2147483647, %v1524_v37  ;;  %v1550_v63 = vadd.f32 1.0, %v1011_v33 }
  0x5a   : > { %786 = vst [vmem:[%s1433_s17 + $0x30] sm:$0xff] %v403_v39  ;;  %v413_v60 = vsel %vm1530_vm1, %v1005_v17, %v409_v55  ;;  %v1552_v0 = vadd.f32 1.0, %v1013_v49  ;;  %v424_v1 = vadd.f32 %v1007_v24, %v423_v58  ;;  %v446_v2 = vand.u32 2147483648, %v1524_v37 }
  0x5b   : > { %v418_v53 = vsel %vm1507_vm13, %v417_v42, %v413_v60  ;;  %v1557_v3 = vadd.f32 1.0, %v1015_v56  ;;  %v1017_v4 = vpop.eup %1016  ;;  %1024 = vrcp.f32 %v1550_v63  ;;  %v461_v57 = vand.u32 2147483648, %v1550_v63  ;;  %v164_v56 = vld [vmem:[%s1304_s24 + $0xc0] sm:$0xff] }
  0x5c   : > { %787 = vst [vmem:[%s1433_s17 + $0x38] sm:$0xff] %v418_v53  ;;  %v1562_v7 = vmul.f32 1.442695, %v189_v51  ;;  %v428_v8 = vsel %vm1545_vm4, %v1007_v24, %v424_v1  ;;  %v459_v9 = vand.u32 2147483647, %v1550_v63  ;;  %1026 = vrcp.f32 %v1552_v0 }
  0x5d   : > { %v1019_v5 = vpop.eup %1018  ;;  %v1568_v10 = vmul.f32 1.442695, %v190_v59  ;;  %v433_v62 = vsel %vm1519_vm0, %v432_v31, %v428_v8  ;;  %vm440_vm3 = vweird.f32 %v1524_v37  ;;  %v474_v35 = vand.u32 2147483647, %v1552_v0 }
  0x5e   : > { %v1021_v11 = vpop.eup %1020  ;;  %v476_v47 = vand.u32 2147483648, %v1552_v0  ;;  %788 = vst [vmem:[%s1433_s17 + $0x40] sm:$0xff] %v433_v62  ;;  %vm1577_vm5 = vcmp.eq.f32.partialorder %v444_v61, 8.507059e+37  ;;  %v447_v54 = vor.u32 1.1754944e-38, %v446_v2  ;;  %1028 = vrcp.f32 %v1557_v3 }
  0x5f   : > { %v1023_v12 = vpop.eup %1022  ;;  %v436_v13 = vmul.f32 %v1021_v11, %v1524_v37  ;;  %vm455_vm6 = vweird.f32 %v1550_v63  ;;  %v462_v14 = vor.u32 1.1754944e-38, %v461_v57  ;;  %vm470_vm7 = vweird.f32 %v1552_v0 }
  0x60   : > { %v489_v15 = vand.u32 2147483647, %v1557_v3  ;;  %vm441_vm8 = vweird.f32 %v1021_v11  ;;  %vm1585_vm9 = vcmp.eq.f32.partialorder %v459_v9, 8.507059e+37  ;;  %v1589_v18 = vadd.f32 1.0, %v1017_v4 }
  0x61   : > { %v437_v16 = vsub.f32 1.0, %v436_v13  ;;  %v1591_v19 = vadd.f32 1.0, %v1019_v5  ;;  %v1025_v41 = vpop.eup %1024  ;;  %vm1593_vm10 = vcmp.eq.f32.partialorder %v474_v35, 8.507059e+37  ;;  %v477_v21 = vor.u32 1.1754944e-38, %v476_v47  ;;  %vm1605_vm12 = vmor %vm440_vm3, %vm441_vm8 }
  0x62   : > { %vm485_vm11 = vweird.f32 %v1557_v3  ;;  %v491_v22 = vand.u32 2147483648, %v1557_v3  ;;  %v1027_v23 = vpop.eup %1026  ;;  %v451_v25 = vmul.f32 %v1025_v41, %v1550_v63  ;;  %1030 = vrcp.f32 %v1589_v18 }
  0x63   : > { %v438_v24 = vmul.f32 %v1021_v11, %v437_v16  ;;  %v1601_v26 = vadd.f32 1.0, %v1023_v12  ;;  %vm456_vm13 = vweird.f32 %v1025_v41  ;;  %v466_v27 = vmul.f32 %v1027_v23, %v1552_v0 }
  0x64   : > { %vm1610_vm14 = vcmp.eq.f32.partialorder %v489_v15, 8.507059e+37  ;;  %1032 = vpow2.f32 %v236_v6  ;;  %v1029_v29 = vpop.eup %1028  ;;  %v452_v31 = vsub.f32 1.0, %v451_v25  ;;  %v504_v32 = vand.u32 2147483647, %v1589_v18  ;;  %vm1626_vm0 = vmor %vm455_vm6, %vm456_vm13 }
  0x65   : > { %v439_v30 = vadd.f32 %v1021_v11, %v438_v24  ;;  %1034 = vrcp.f32 %v1591_v19  ;;  %v467_v34 = vsub.f32 1.0, %v466_v27  ;;  %vm471_vm15 = vweird.f32 %v1027_v23 }
  0x66   : > { %v481_v36 = vmul.f32 %v1029_v29, %v1557_v3  ;;  %v506_v38 = vand.u32 2147483648, %v1589_v18  ;;  %v453_v40 = vmul.f32 %v1025_v41, %v452_v31  ;;  %v492_v33 = vor.u32 1.1754944e-38, %v491_v22  ;;  %vm1634_vm2 = vmor %vm470_vm7, %vm471_vm15 }
  0x67   : > { %v443_v37 = vsel %vm1605_vm12, %v1021_v11, %v439_v30  ;;  %v191_v44 = vsub.f32 0.0, %v159_v46  ;;  %v468_v49 = vmul.f32 %v1027_v23, %v467_v34  ;;  %vm486_vm1 = vweird.f32 %v1029_v29  ;;  %v162_v46 = vld [vmem:[%s1304_s24 + $0xb0] sm:$0xff]  ;;  %v163_v34 = vld [vmem:[%s1304_s24 + $0xb8] sm:$0xff] }
  0x68   : > { %v448_v45 = vsel %vm1577_vm5, %v447_v54, %v443_v37  ;;  %v482_v50 = vsub.f32 1.0, %v481_v36  ;;  %v1031_v55 = vpop.eup %1030  ;;  %v454_v51 = vadd.f32 %v1025_v41, %v453_v40  ;;  %vm500_vm4 = vweird.f32 %v1589_v18  ;;  %vm1650_vm5 = vmor %vm485_vm11, %vm486_vm1 }
  0x69   : > { %789 = vst [vmem:[%s1433_s17 + $0x48] sm:$0xff] %v448_v45  ;;  %vm1639_vm3 = vcmp.eq.f32.partialorder %v504_v32, 8.507059e+37  ;;  %1036 = vrcp.f32 %v1601_v26  ;;  %v469_v59 = vadd.f32 %v1027_v23, %v468_v49  ;;  %v496_v52 = vmul.f32 %v1031_v55, %v1589_v18 }
  0x6a   : > { %v1033_v58 = vpop.eup %1032  ;;  %v483_v60 = vmul.f32 %v1029_v29, %v482_v50  ;;  %v507_v61 = vor.u32 1.1754944e-38, %v506_v38  ;;  %v458_v0 = vsel %vm1626_vm0, %v1025_v41, %v454_v51  ;;  %vm501_vm6 = vweird.f32 %v1031_v55 }
  0x6b   : > { %v1035_v63 = vpop.eup %1034  ;;  %v519_v1 = vand.u32 2147483647, %v1591_v19  ;;  %v521_v2 = vand.u32 2147483648, %v1591_v19  ;;  %v463_v4 = vsel %vm1585_vm9, %v462_v14, %v458_v0  ;;  %v473_v57 = vsel %vm1634_vm2, %v1027_v23, %v469_v59 }
  0x6c   : > { %v484_v6 = vadd.f32 %v1029_v29, %v483_v60  ;;  %v497_v5 = vsub.f32 1.0, %v496_v52  ;;  %790 = vst [vmem:[%s1433_s17 + $0x50] sm:$0xff] %v463_v4  ;;  %v478_v3 = vsel %vm1593_vm10, %v477_v21, %v473_v57  ;;  %v511_v8 = vmul.f32 %v1035_v63, %v1591_v19  ;;  %vm1676_vm10 = vmor %vm500_vm4, %vm501_vm6  ;;  %v165_v52 = vld [vmem:[%s1304_s24 + $0xc8] sm:$0xff] }
  0x6d   : > { %vm515_vm7 = vweird.f32 %v1591_v19  ;;  %vm530_vm8 = vweird.f32 %v1601_v26  ;;  %791 = vst [vmem:[%s1433_s17 + $0x58] sm:$0xff] %v478_v3  ;;  %vm516_vm9 = vweird.f32 %v1035_v63  ;;  %v1669_v62 = vadd.f32 1.0, %v1033_v58 }
  0x6e   : > { %v488_v9 = vsel %vm1650_vm5, %v1029_v29, %v484_v6  ;;  %v498_v11 = vmul.f32 %v1031_v55, %v497_v5  ;;  %v512_v13 = vsub.f32 1.0, %v511_v8  ;;  %1038 = vpow2.f32 %v1562_v7  ;;  %v160_v7 = vld [vmem:[%s1304_s24 + $0xa0] sm:$0xff]  ;;  %vm1697_vm12 = vmor %vm515_vm7, %vm516_vm9 }
  0x6f   : > { %v1037_v35 = vpop.eup %1036  ;;  %v493_v47 = vsel %vm1610_vm14, %v492_v33, %v488_v9  ;;  %v242_v43 = vmul.f32 1.442695, %v191_v44  ;;  %vm1682_vm11 = vcmp.eq.f32.partialorder %v519_v1, 8.507059e+37  ;;  %v522_v15 = vor.u32 1.1754944e-38, %v521_v2 }
  0x70   : > { %792 = vst [vmem:[%s1433_s17 + $0x60] sm:$0xff] %v493_v47  ;;  %v499_v54 = vadd.f32 %v1031_v55, %v498_v11  ;;  %v526_v16 = vmul.f32 %v1037_v35, %v1601_v26  ;;  %v513_v17 = vmul.f32 %v1035_v63, %v512_v13  ;;  %v534_v18 = vand.u32 2147483647, %v1601_v26 }
  0x71   : > { %v536_v41 = vand.u32 2147483648, %v1601_v26  ;;  %1040 = vrcp.f32 %v1669_v62  ;;  %vm531_vm13 = vweird.f32 %v1037_v35  ;;  %v549_v42 = vand.u32 2147483647, %v1669_v62 }
  0x72   : > { %v503_v21 = vsel %vm1676_vm10, %v1031_v55, %v499_v54  ;;  %v527_v23 = vsub.f32 1.0, %v526_v16  ;;  %1042 = vpow2.f32 %v1568_v10  ;;  %v514_v25 = vadd.f32 %v1035_v63, %v513_v17  ;;  %vm1711_vm14 = vmor %vm530_vm8, %vm531_vm13 }
  0x73   : > { %v508_v24 = vsel %vm1639_vm3, %v507_v61, %v503_v21  ;;  %1044 = vpow2.f32 %v242_v43  ;;  %v192_v19 = vsub.f32 0.0, %v160_v7  ;;  %v193_v28 = vsub.f32 0.0, %v161_v20  ;;  %v168_v7 = vld [vmem:[%s1304_s24 + $0xe0] sm:$0xff] }
  0x74   : > { %793 = vst [vmem:[%s1433_s17 + $0x68] sm:$0xff] %v508_v24  ;;  %v528_v27 = vmul.f32 %v1037_v35, %v527_v23  ;;  %v1039_v29 = vpop.eup %1038  ;;  %v518_v30 = vsel %vm1697_vm12, %v1035_v63, %v514_v25  ;;  %vm1715_vm15 = vcmp.eq.f32.partialorder %v534_v18, 8.507059e+37  ;;  %v537_v32 = vor.u32 1.1754944e-38, %v536_v41 }
  0x75   : > { %vm545_vm0 = vweird.f32 %v1669_v62  ;;  %v523_v36 = vsel %vm1682_vm11, %v522_v15, %v518_v30  ;;  %v1723_v37 = vadd.f32 1.0, %v1039_v29  ;;  %v244_v26 = vmul.f32 1.442695, %v192_v19 }
  0x76   : > { %v529_v38 = vadd.f32 %v1037_v35, %v528_v27  ;;  %794 = vst [vmem:[%s1433_s17 + $0x70] sm:$0xff] %v523_v36  ;;  %vm1726_vm1 = vcmp.eq.f32.partialorder %v549_v42, 8.507059e+37  ;;  %v551_v44 = vand.u32 2147483648, %v1669_v62  ;;  %v246_v45 = vmul.f32 1.442695, %v193_v28  ;;  %v1787_v42 = vld [vmem:[%s1304_s24 + $0xd0] sm:$0xff] }
  0x77   : > { %v1041_v40 = vpop.eup %1040  ;;  %v194_v48 = vsub.f32 0.0, %v162_v46  ;;  %1046 = vrcp.f32 %v1723_v37  ;;  %v195_v51 = vsub.f32 0.0, %v163_v34  ;;  %v564_v59 = vand.u32 2147483647, %v1723_v37  ;;  %v1790_v27 = vld [vmem:[%s1304_s24 + $0xd8] sm:$0xff] }
  0x78   : > { %v1043_v49 = vpop.eup %1042  ;;  %v533_v50 = vsel %vm1711_vm14, %v1037_v35, %v529_v38  ;;  %v541_v55 = vmul.f32 %v1041_v40, %v1669_v62  ;;  %vm546_vm2 = vweird.f32 %v1041_v40  ;;  %v566_v60 = vand.u32 2147483648, %v1723_v37 }
  0x79   : > { %v1045_v39 = vpop.eup %1044  ;;  %v538_v58 = vsel %vm1715_vm15, %v537_v32, %v533_v50  ;;  %v1742_v63 = vadd.f32 1.0, %v1043_v49  ;;  %1048 = vpow2.f32 %v244_v26  ;;  %v552_v53 = vor.u32 1.1754944e-38, %v551_v44  ;;  %vm1750_vm4 = vmor %vm545_vm0, %vm546_vm2 }
  0x7a   : > { %795 = vst [vmem:[%s1433_s17 + $0x78] sm:$0xff] %v538_v58  ;;  %v542_v61 = vsub.f32 1.0, %v541_v55  ;;  %v1744_v0 = vadd.f32 1.0, %v1045_v39  ;;  %1050 = vpow2.f32 %v246_v45  ;;  %v248_v1 = vmul.f32 1.442695, %v194_v48 }
  0x7b   : > { %v196_v2 = vsub.f32 0.0, %v164_v56  ;;  %1052 = vrcp.f32 %v1742_v63  ;;  %v250_v57 = vmul.f32 1.442695, %v195_v51  ;;  %v197_v6 = vsub.f32 0.0, %v165_v52 }
  0x7c   : > { %v543_v4 = vmul.f32 %v1041_v40, %v542_v61  ;;  %vm560_vm3 = vweird.f32 %v1723_v37  ;;  %vm1755_vm5 = vcmp.eq.f32.partialorder %v564_v59, 8.507059e+37  ;;  %v567_v8 = vor.u32 1.1754944e-38, %v566_v60 }
  0x7d   : > { %1054 = vrcp.f32 %v1744_v0  ;;  %v1047_v9 = vpop.eup %1046  ;;  %vm575_vm6 = vweird.f32 %v1742_v63  ;;  %v579_v35 = vand.u32 2147483647, %v1742_v63  ;;  %v581_v62 = vand.u32 2147483648, %v1742_v63 }
  0x7e   : > { %v544_v11 = vadd.f32 %v1041_v40, %v543_v4  ;;  %v556_v47 = vmul.f32 %v1047_v9, %v1723_v37  ;;  %vm590_vm7 = vweird.f32 %v1744_v0  ;;  %v594_v12 = vand.u32 2147483647, %v1744_v0 }
  0x7f   : > { %1056 = vpow2.f32 %v248_v1  ;;  %v1049_v13 = vpop.eup %1048  ;;  %v596_v54 = vand.u32 2147483648, %v1744_v0  ;;  %v252_v14 = vmul.f32 1.442695, %v196_v2  ;;  %vm561_vm8 = vweird.f32 %v1047_v9 }
  0x80   : > { %v548_v43 = vsel %vm1750_vm4, %v1041_v40, %v544_v11  ;;  %1058 = vpow2.f32 %v250_v57  ;;  %v1051_v15 = vpop.eup %1050  ;;  %v557_v17 = vsub.f32 1.0, %v556_v47  ;;  %v1771_v18 = vadd.f32 1.0, %v1049_v13  ;;  %vm1795_vm11 = vmor %vm560_vm3, %vm561_vm8 }
  0x81   : > { %v553_v16 = vsel %vm1726_vm1, %v552_v53, %v548_v43  ;;  %v1053_v41 = vpop.eup %1052  ;;  %vm1774_vm9 = vcmp.eq.f32.partialorder %v579_v35, 8.507059e+37  ;;  %v582_v20 = vor.u32 1.1754944e-38, %v581_v62  ;;  %v1778_v21 = vadd.f32 1.0, %v1051_v15 }
  0x82   : > { %796 = vst [vmem:[%s1433_s17 + $0x80] sm:$0xff] %v553_v16  ;;  %1060 = vpow2.f32 %v252_v14  ;;  %v558_v23 = vmul.f32 %v1047_v9, %v557_v17  ;;  %v571_v24 = vmul.f32 %v1053_v41, %v1742_v63  ;;  %vm1781_vm10 = vcmp.eq.f32.partialorder %v594_v12, 8.507059e+37 }
  0x83   : > { %v1055_v22 = vpop.eup %1054  ;;  %1062 = vrcp.f32 %v1771_v18  ;;  %v597_v46 = vor.u32 1.1754944e-38, %v596_v54  ;;  %v609_v29 = vand.u32 2147483647, %v1771_v18  ;;  %v1801_v30 = vmul.f32 1.442695, %v197_v6 }
  0x84   : > { %v586_v28 = vmul.f32 %v1055_v22, %v1744_v0  ;;  %v559_v31 = vadd.f32 %v1047_v9, %v558_v23  ;;  %v572_v32 = vsub.f32 1.0, %v571_v24  ;;  %vm576_vm12 = vweird.f32 %v1053_v41 }
  0x85   : > { %v1057_v10 = vpop.eup %1056  ;;  %1064 = vrcp.f32 %v1778_v21  ;;  %vm591_vm13 = vweird.f32 %v1055_v22  ;;  %v198_v38 = vsub.f32 0.0, %v1787_v42  ;;  %v199_v37 = vsub.f32 0.0, %v1790_v27  ;;  %vm1814_vm15 = vmor %vm575_vm6, %vm576_vm12 }
  0x86   : > { %v1059_v34 = vpop.eup %1058  ;;  %v587_v36 = vsub.f32 1.0, %v586_v28  ;;  %v563_v26 = vsel %vm1795_vm11, %v1047_v9, %v559_v31  ;;  %v573_v40 = vmul.f32 %v1053_v41, %v572_v32  ;;  %vm605_vm14 = vweird.f32 %v1771_v18  ;;  %vm1829_vm2 = vmor %vm590_vm7, %vm591_vm13 }
  0x87   : > { %v611_v33 = vand.u32 2147483648, %v1771_v18  ;;  %v568_v45 = vsel %vm1755_vm5, %v567_v8, %v563_v26  ;;  %vm1818_vm0 = vcmp.eq.f32.partialorder %v609_v29, 8.507059e+37  ;;  %vm620_vm1 = vweird.f32 %v1778_v21 }
  0x88   : > { %v1061_v44 = vpop.eup %1060  ;;  %v588_v49 = vmul.f32 %v1055_v22, %v587_v36  ;;  %v1823_v55 = vadd.f32 1.0, %v1057_v10  ;;  %797 = vst [vmem:[%s1433_s17 + $0x88] sm:$0xff] %v568_v45  ;;  %v574_v56 = vadd.f32 %v1053_v41, %v573_v40  ;;  %v624_v58 = vand.u32 2147483647, %v1778_v21  ;;  %v171_v40 = vld [vmem:[%s1304_s24 + $0xf8] sm:$0xff] }
  0x89   : > { %v1063_v51 = vpop.eup %1062  ;;  %v626_v59 = vand.u32 2147483648, %v1778_v21  ;;  %v1835_v60 = vadd.f32 1.0, %v1059_v34  ;;  %v1839_v63 = vadd.f32 1.0, %v1061_v44  ;;  %v612_v8 = vor.u32 1.1754944e-38, %v611_v33 }
  0x8a   : > { %v589_v52 = vadd.f32 %v1055_v22, %v588_v49  ;;  %v601_v61 = vmul.f32 %v1063_v51, %v1771_v18  ;;  %1066 = vrcp.f32 %v1823_v55  ;;  %v578_v53 = vsel %vm1814_vm15, %v1053_v41, %v574_v56 }
  0x8b   : > { %v1065_v0 = vpop.eup %1064  ;;  %vm606_vm4 = vweird.f32 %v1063_v51  ;;  %v639_v1 = vand.u32 2147483647, %v1823_v55  ;;  %v641_v2 = vand.u32 2147483648, %v1823_v55  ;;  %v583_v4 = vsel %vm1774_vm9, %v582_v20, %v578_v53  ;;  %v169_v20 = vld [vmem:[%s1304_s24 + $0xe8] sm:$0xff] }
  0x8c   : > { %v593_v57 = vsel %vm1829_vm2, %v1055_v22, %v589_v52  ;;  %v602_v6 = vsub.f32 1.0, %v601_v61  ;;  %v616_v5 = vmul.f32 %v1065_v0, %v1778_v21  ;;  %798 = vst [vmem:[%s1433_s17 + $0x90] sm:$0xff] %v583_v4  ;;  %vm1853_vm3 = vcmp.eq.f32.partialorder %v624_v58, 8.507059e+37  ;;  %vm1862_vm6 = vmor %vm605_vm14, %vm606_vm4 }
  0x8d   : > { %v598_v3 = vsel %vm1781_vm10, %v597_v46, %v593_v57  ;;  %v627_v11 = vor.u32 1.1754944e-38, %v626_v59  ;;  %vm621_vm5 = vweird.f32 %v1065_v0  ;;  %1068 = vrcp.f32 %v1835_v60 }
  0x8e   : > { %799 = vst [vmem:[%s1433_s17 + $0x98] sm:$0xff] %v598_v3  ;;  %v603_v35 = vmul.f32 %v1063_v51, %v602_v6  ;;  %v617_v62 = vsub.f32 1.0, %v616_v5  ;;  %vm635_vm7 = vweird.f32 %v1823_v55  ;;  %vm1867_vm8 = vcmp.eq.f32.partialorder %v639_v1, 8.507059e+37  ;;  %vm1876_vm10 = vmor %vm620_vm1, %vm621_vm5 }
  0x8f   : > { %v642_v13 = vor.u32 1.1754944e-38, %v641_v2  ;;  %1070 = vrcp.f32 %v1839_v63  ;;  %vm650_vm9 = vweird.f32 %v1835_v60  ;;  %v654_v15 = vand.u32 2147483647, %v1835_v60 }
  0x90   : > { %v1067_v43 = vpop.eup %1066  ;;  %v604_v54 = vadd.f32 %v1063_v51, %v603_v35  ;;  %v618_v14 = vmul.f32 %v1065_v0, %v617_v62  ;;  %v656_v18 = vand.u32 2147483648, %v1835_v60  ;;  %vm665_vm11 = vweird.f32 %v1839_v63 }
  0x91   : > { %v631_v17 = vmul.f32 %v1067_v43, %v1823_v55  ;;  %v669_v41 = vand.u32 2147483647, %v1839_v63  ;;  %vm636_vm12 = vweird.f32 %v1067_v43  ;;  %v671_v21 = vand.u32 2147483648, %v1839_v63 }
  0x92   : > { %v608_v22 = vsel %vm1862_vm6, %v1063_v51, %v604_v54  ;;  %v619_v23 = vadd.f32 %v1065_v0, %v618_v14  ;;  %1072 = vpow2.f32 %v1801_v30  ;;  %v256_v19 = vmul.f32 1.442695, %v198_v38  ;;  %v170_v38 = vld [vmem:[%s1304_s24 + $0xf0] sm:$0xff]  ;;  %vm1907_vm13 = vmor %vm635_vm7, %vm636_vm12 }
  0x93   : > { %v613_v24 = vsel %vm1818_vm0, %v612_v8, %v608_v22  ;;  %v632_v25 = vsub.f32 1.0, %v631_v17  ;;  %v1069_v28 = vpop.eup %1068  ;;  %v258_v29 = vmul.f32 1.442695, %v199_v37  ;;  %v200_v10 = vsub.f32 0.0, %v168_v7 }
  0x94   : > { %800 = vst [vmem:[%s1433_s17 + $0xa0] sm:$0xff] %v613_v24  ;;  %v623_v46 = vsel %vm1876_vm10, %v1065_v0, %v619_v23  ;;  %v201_v31 = vsub.f32 0.0, %v169_v20  ;;  %v646_v30 = vmul.f32 %v1069_v28, %v1835_v60  ;;  %v657_v42 = vor.u32 1.1754944e-38, %v656_v18 }
  0x95   : > { %v1071_v32 = vpop.eup %1070  ;;  %v628_v34 = vsel %vm1853_vm3, %v627_v11, %v623_v46  ;;  %v633_v36 = vmul.f32 %v1067_v43, %v632_v25  ;;  %vm651_vm14 = vweird.f32 %v1069_v28  ;;  %1074 = vpow2.f32 %v256_v19 }
  0x96   : > { %801 = vst [vmem:[%s1433_s17 + $0xa8] sm:$0xff] %v628_v34  ;;  %v661_v27 = vmul.f32 %v1071_v32, %v1839_v63  ;;  %v260_v37 = vmul.f32 1.442695, %v200_v10  ;;  %v647_v44 = vsub.f32 1.0, %v646_v30  ;;  %1076 = vpow2.f32 %v258_v29  ;;  %vm1920_vm0 = vmor %vm650_vm9, %vm651_vm14 }
  0x97   : > { %v634_v33 = vadd.f32 %v1067_v43, %v633_v36  ;;  %v262_v45 = vmul.f32 1.442695, %v201_v31  ;;  %vm666_vm15 = vweird.f32 %v1071_v32  ;;  %v202_v49 = vsub.f32 0.0, %v170_v38 }
  0x98   : > { %v662_v48 = vsub.f32 1.0, %v661_v27  ;;  %1078 = vpow2.f32 %v260_v37  ;;  %v1073_v50 = vpop.eup %1072  ;;  %v648_v51 = vmul.f32 %v1069_v28, %v647_v44  ;;  %v203_v56 = vsub.f32 0.0, %v171_v40  ;;  %vm1928_vm2 = vmor %vm665_vm11, %vm666_vm15 }
  0x99   : > { %v638_v55 = vsel %vm1907_vm13, %v1067_v43, %v634_v33  ;;  %1080 = vpow2.f32 %v262_v45  ;;  %v293_v52 = vadd.f32 1.0, %v1073_v50  ;;  %v264_v61 = vmul.f32 1.442695, %v202_v49 }
  0x9a   : > { %v643_v39 = vsel %vm1867_vm8, %v642_v13, %v638_v55  ;;  %v663_v59 = vmul.f32 %v1071_v32, %v662_v48  ;;  %v649_v0 = vadd.f32 %v1069_v28, %v648_v51  ;;  %vm655_vm1 = vcmp.eq.f32.partialorder %v654_v15, 8.507059e+37 }
  0x9b   : > { %802 = vst [vmem:[%s1433_s17 + $0xb0] sm:$0xff] %v643_v39  ;;  %v672_v1 = vor.u32 1.1754944e-38, %v671_v21  ;;  %v1075_v60 = vpop.eup %1074  ;;  %vm670_vm4 = vcmp.eq.f32.partialorder %v669_v41, 8.507059e+37  ;;  %1082 = vrcp.f32 %v293_v52  ;;  %v266_v5 = vmul.f32 1.442695, %v203_v56 }
  0x9c   : > { %v664_v2 = vadd.f32 %v1071_v32, %v663_v59  ;;  %v1077_v4 = vpop.eup %1076  ;;  %v653_v57 = vsel %vm1920_vm0, %v1069_v28, %v649_v0  ;;  %v294_v6 = vadd.f32 1.0, %v1075_v60  ;;  %1084 = vpow2.f32 %v264_v61 }
  0x9d   : > { %v658_v8 = vsel %vm655_vm1, %v657_v42, %v653_v57  ;;  %v295_v9 = vadd.f32 1.0, %v1077_v4  ;;  %v684_v62 = vand.u32 2147483647, %v293_v52  ;;  %v686_v47 = vand.u32 2147483648, %v293_v52 }
  0x9e   : > { %v1079_v3 = vpop.eup %1078  ;;  %v668_v63 = vsel %vm1928_vm2, %v1071_v32, %v664_v2  ;;  %803 = vst [vmem:[%s1433_s17 + $0xb8] sm:$0xff] %v658_v8  ;;  %1086 = vrcp.f32 %v294_v6  ;;  %v699_v54 = vand.u32 2147483647, %v294_v6  ;;  %v701_v14 = vand.u32 2147483648, %v294_v6 }
  0x9f   : > { %v1081_v11 = vpop.eup %1080  ;;  %v673_v35 = vsel %vm670_vm4, %v672_v1, %v668_v63  ;;  %1088 = vrcp.f32 %v295_v9  ;;  %v1938_v12 = vadd.f32 1.0, %v1079_v3  ;;  %v714_v16 = vand.u32 2147483647, %v295_v9 }
  0xa0   : > { %804 = vst [vmem:[%s1433_s17 + $0xc0] sm:$0xff] %v673_v35  ;;  %v1940_v13 = vadd.f32 1.0, %v1081_v11  ;;  %1090 = vpow2.f32 %v266_v5  ;;  %v716_v17 = vand.u32 2147483648, %v295_v9  ;;  %vm680_vm3 = vweird.f32 %v293_v52 }
  0xa1   : > { %v1083_v43 = vpop.eup %1082  ;;  %vm1942_vm5 = vcmp.eq.f32.partialorder %v684_v62, 8.507059e+37  ;;  %v687_v7 = vor.u32 1.1754944e-38, %v686_v47  ;;  %1092 = vrcp.f32 %v1938_v12  ;;  %vm695_vm7 = vweird.f32 %v294_v6 }
  0xa2   : > { %v676_v15 = vmul.f32 %v1083_v43, %v293_v52  ;;  %v1085_v18 = vpop.eup %1084  ;;  %vm681_vm6 = vweird.f32 %v1083_v43  ;;  %1094 = vrcp.f32 %v1940_v13  ;;  %vm1948_vm8 = vcmp.eq.f32.partialorder %v699_v54, 8.507059e+37 }
  0xa3   : > { %v702_v25 = vor.u32 1.1754944e-38, %v701_v14  ;;  %vm710_vm9 = vweird.f32 %v295_v9  ;;  %vm1952_vm10 = vcmp.eq.f32.partialorder %v714_v16, 8.507059e+37  ;;  %v717_v29 = vor.u32 1.1754944e-38, %v716_v17  ;;  %vm1957_vm11 = vmor %vm680_vm3, %vm681_vm6 }
  0xa4   : > { %v1087_v20 = vpop.eup %1086  ;;  %v677_v22 = vsub.f32 1.0, %v676_v15  ;;  %vm725_vm13 = vweird.f32 %v1938_v12  ;;  %v1962_v34 = vadd.f32 1.0, %v1085_v18  ;;  %v729_v42 = vand.u32 2147483647, %v1938_v12 }
  0xa5   : > { %v1089_v23 = vpop.eup %1088  ;;  %v691_v21 = vmul.f32 %v1087_v20, %v294_v6  ;;  %vm696_vm12 = vweird.f32 %v1087_v20  ;;  %v731_v27 = vand.u32 2147483648, %v1938_v12  ;;  %vm740_vm0 = vweird.f32 %v1940_v13 }
  0xa6   : > { %v678_v19 = vmul.f32 %v1083_v43, %v677_v22  ;;  %v706_v28 = vmul.f32 %v1089_v23, %v295_v9  ;;  %v1091_v10 = vpop.eup %1090  ;;  %vm711_vm14 = vweird.f32 %v1089_v23  ;;  %1096 = vrcp.f32 %v1962_v34  ;;  %vm1972_vm15 = vmor %vm695_vm7, %vm696_vm12 }
  0xa7   : > { %v692_v32 = vsub.f32 1.0, %v691_v21  ;;  %v1093_v38 = vpop.eup %1092  ;;  %v1967_v37 = vadd.f32 1.0, %v1091_v10  ;;  %vm1982_vm1 = vmor %vm710_vm9, %vm711_vm14  ;;  %v744_v56 = vand.u32 2147483647, %v1940_v13  ;;  %v746_v59 = vand.u32 2147483648, %v1940_v13 }
  0xa8   : > { %v679_v36 = vadd.f32 %v1083_v43, %v678_v19  ;;  %v707_v30 = vsub.f32 1.0, %v706_v28  ;;  %v1095_v40 = vpop.eup %1094  ;;  %v721_v48 = vmul.f32 %v1093_v38, %v1938_v12  ;;  %vm726_vm2 = vweird.f32 %v1093_v38 }
  0xa9   : > { %v693_v26 = vmul.f32 %v1087_v20, %v692_v32  ;;  %v736_v51 = vmul.f32 %v1095_v40, %v1940_v13  ;;  %vm741_vm4 = vweird.f32 %v1095_v40  ;;  %1098 = vrcp.f32 %v1967_v37  ;;  %vm2002_vm3 = vmor %vm725_vm13, %vm726_vm2 }
  0xaa   : > { %v683_v33 = vsel %vm1957_vm11, %v1083_v43, %v679_v36  ;;  %v708_v45 = vmul.f32 %v1089_v23, %v707_v30  ;;  %v722_v58 = vsub.f32 1.0, %v721_v48  ;;  %v732_v57 = vor.u32 1.1754944e-38, %v731_v27  ;;  %vm2009_vm6 = vmor %vm740_vm0, %vm741_vm4 }
  0xab   : > { %v688_v49 = vsel %vm1942_vm5, %v687_v7, %v683_v33  ;;  %v694_v50 = vadd.f32 %v1087_v20, %v693_v26  ;;  %v737_v61 = vsub.f32 1.0, %v736_v51  ;;  %vm730_vm5 = vcmp.eq.f32.partialorder %v729_v42, 8.507059e+37 }
  0xac   : > { %805 = vst [vmem:[%s1433_s17 + $0xc8] sm:$0xff] %v688_v49  ;;  %v709_v39 = vadd.f32 %v1089_v23, %v708_v45  ;;  %v723_v1 = vmul.f32 %v1093_v38, %v722_v58  ;;  %v1097_v60 = vpop.eup %1096  ;;  %v747_v8 = vor.u32 1.1754944e-38, %v746_v59  ;;  %vm745_vm7 = vcmp.eq.f32.partialorder %v744_v56, 8.507059e+37 }
  0xad   : > { %v698_v52 = vsel %vm1972_vm15, %v1087_v20, %v694_v50  ;;  %v738_v6 = vmul.f32 %v1095_v40, %v737_v61  ;;  %v751_v63 = vmul.f32 %v1097_v60, %v1962_v34  ;;  %v759_v11 = vand.u32 2147483647, %v1962_v34 }
  0xae   : > { %v703_v0 = vsel %vm1948_vm8, %v702_v25, %v698_v52  ;;  %v713_v53 = vsel %vm1982_vm1, %v1089_v23, %v709_v39  ;;  %v724_v5 = vadd.f32 %v1093_v38, %v723_v1  ;;  %v761_v35 = vand.u32 2147483648, %v1962_v34 }
  0xaf   : > { %806 = vst [vmem:[%s1433_s17 + $0xd0] sm:$0xff] %v703_v0  ;;  %v718_v2 = vsel %vm1952_vm10, %v717_v29, %v713_v53  ;;  %v739_v9 = vadd.f32 %v1095_v40, %v738_v6  ;;  %v752_v47 = vsub.f32 1.0, %v751_v63  ;;  %vm755_vm8 = vweird.f32 %v1962_v34  ;;  %v1099_v12 = vpop.eup %1098 }
  0xb0   : > { %807 = vst [vmem:[%s1433_s17 + $0xd8] sm:$0xff] %v718_v2  ;;  %v728_v62 = vsel %vm2002_vm3, %v1093_v38, %v724_v5  ;;  %vm756_vm9 = vweird.f32 %v1097_v60  ;;  %v766_v15 = vmul.f32 %v1099_v12, %v1967_v37  ;;  %vm760_vm11 = vcmp.eq.f32.partialorder %v759_v11, 8.507059e+37 }
  0xb1   : > { %v733_v13 = vsel %vm730_vm5, %v732_v57, %v728_v62  ;;  %v743_v43 = vsel %vm2009_vm6, %v1095_v40, %v739_v9  ;;  %v753_v14 = vmul.f32 %v1097_v60, %v752_v47  ;;  %vm757_vm10 = vmor %vm755_vm8, %vm756_vm9  ;;  %v762_v16 = vor.u32 1.1754944e-38, %v761_v35 }
  0xb2   : > { %808 = vst [vmem:[%s1433_s17 + $0xe0] sm:$0xff] %v733_v13  ;;  %v748_v54 = vsel %vm745_vm7, %v747_v8, %v743_v43  ;;  %vm770_vm12 = vweird.f32 %v1967_v37  ;;  %v776_v17 = vand.u32 2147483648, %v1967_v37  ;;  %v767_v41 = vsub.f32 1.0, %v766_v15 }
  0xb3   : > { %809 = vst [vmem:[%s1433_s17 + $0xe8] sm:$0xff] %v748_v54  ;;  %v754_v18 = vadd.f32 %v1097_v60, %v753_v14  ;;  %vm771_vm13 = vweird.f32 %v1099_v12  ;;  %v774_v7 = vand.u32 2147483647, %v1967_v37 }
  0xb4   : > { %v768_v22 = vmul.f32 %v1099_v12, %v767_v41  ;;  %vm772_vm14 = vmor %vm770_vm12, %vm771_vm13  ;;  %v777_v21 = vor.u32 1.1754944e-38, %v776_v17 }
  0xb5   : > { %v758_v20 = vsel %vm757_vm10, %v1097_v60, %v754_v18  ;;  %vm775_vm15 = vcmp.eq.f32.partialorder %v774_v7, 8.507059e+37 }
  0xb6   : > { %v763_v23 = vsel %vm760_vm11, %v762_v16, %v758_v20  ;;  %v769_v24 = vadd.f32 %v1099_v12, %v768_v22 }
  0xb7   : > { %810 = vst [vmem:[%s1433_s17 + $0xf0] sm:$0xff] %v763_v23 }
  0xb8   : > { %v773_v25 = vsel %vm772_vm14, %v1099_v12, %v769_v24 }
  0xb9   : > { %v778_v19 = vsel %vm775_vm15, %v777_v21, %v773_v25 }
  0xba   : > { %811 = vst [vmem:[%s1433_s17 + $0xf8] sm:$0xff] %v778_v19 }
  0xbb   : > { %1157 = shalt.err (!%p1154_p4)
}
  0xbc   : > { %s1200_s16 = smov 512   ;;  %s1201_s20 = smov 32  }
  0xbd   : > { %924 = dma.vmem_to_hbm [thread:$0]  (%p1262_p11), %s827_s28, 4096, %s829_s29, %s813_s30, %s1200_s16, %s1200_s16, %s1201_s20  }
  0xbe PF: > { %s843_s21 = sand.u32 1, %s1184_s6   ;;  %p2181_p7 = scmp.ge.s32.totalorder %s1196_s9, 2 }
  0xbf   : > { %s844_s22 = scalar_lea.sflag [#allocation4], %s843_s21 }
  0xc0   : > { %p931_p5 = pnand %p2181_p7, %p1266_p12 }
  0xc2   : > { %p932_p8 = pneg %p931_p5 }
  0xc4   : > { %1179 = dma.done.wait (%p932_p8), %s844_s22, 4096  }
  0xc5   : > { %1181 = vsyncadd (%p932_p8), %s844_s22, 4294963200  ;;  %p14_p10 = scmp.ge.s32.totalorder %s1237_s12, 4   ;;  %s2182_s6 = smov %s1188_s7 }
  0xc6   : > { %s2183_s7 = smov %s1192_s8  ;;  %s2184_s8 = smov %s1249_s15 }
  0xc7   : > { %s2185_s9 = smov %s1237_s12  ;;  %16 = sbr.rel (!%p14_p10) target bundleno = 5 (0x5), region = 69 }
  0xcc   :  { %850 = vsyncpa [#allocation3], 1 }
  0xcd   :  { %852 = vsyncpa [#allocation3 + $0x1], 1 }
  0xce   :  { %853 = vsyncpa [#allocation4], 1 }
  0xcf   :  { %855 = vsyncpa [#allocation4 + $0x1], 1 }

</bundles_post_ra>
